<compile_context>
chip_gen: v7x
topology: tpu7x:2x2x1
jax: 0.10.0
libtpu: 0.0.40
codegen_flags: <defaults>
</compile_context>

<pallas_src>
import functools

import jax
import jax.numpy as jnp
from jax.experimental import pallas as pl
from jax.experimental.pallas import tpu as pltpu

_LANE = 128
_TM_CAP = 512            # rows per tile (amortizes ~0.35us grid-step overhead)
_TN_CAP = 1024           # output-column tile cap
_TK_CAP = 1024           # reduction tile cap
_RESIDENT_W_BYTES = 8 << 20    # weight-resident fast-path threshold
_FAST_VMEM_BUDGET = 24 << 20   # double-buffered working-set budget (v7x safe)


def _round_up(x: int, m: int) -> int:
    return ((x + m - 1) // m) * m


def _cdiv(a: int, b: int) -> int:
    return (a + b - 1) // b


def _sublane_pack(dtype) -> int:
    """Rows per packed sublane group: f32 -> 8, bf16 -> 16, int8/fp8 -> 32."""
    return max(8, 32 // jnp.dtype(dtype).itemsize)


def _pick_feature_tile(dim: int, cap: int):
    """Largest multiple-of-128 tile <= cap dividing round_up(dim, 128)."""
    dp = _round_up(dim, _LANE)
    t = min(cap, dp)
    while dp % t:
        t -= _LANE
    return t, dp


def _pick_row_tile(m: int, cap: int, pack: int):
    """Row tile (multiple of `pack`) that keeps M-axis padding small."""
    mp_min = _round_up(m, pack)
    if mp_min <= cap:
        return mp_min, mp_min
    nblk = _cdiv(m, cap)
    tm = _round_up(_cdiv(m, nblk), pack)
    return tm, nblk * tm


def _linear_fullk_kernel(x_ref, w_ref, b_ref, o_ref):
    # Single reduction step: MXU matmul with f32 accumulation, bias, cast out.
    acc = jnp.dot(x_ref[...], w_ref[...], preferred_element_type=jnp.float32)
    o_ref[...] = (acc + b_ref[...].astype(jnp.float32)).astype(o_ref.dtype)


def _linear_ktiled_kernel(x_ref, w_ref, b_ref, o_ref, acc_ref):
    @pl.when(pl.program_id(2) == 0)
    def _():
        acc_ref[...] = jnp.zeros_like(acc_ref)

    acc_ref[...] += jnp.dot(x_ref[...], w_ref[...],
                            preferred_element_type=jnp.float32)

    @pl.when(pl.program_id(2) == pl.num_programs(2) - 1)
    def _():
        o_ref[...] = (acc_ref[...] + b_ref[...].astype(jnp.float32)).astype(
            o_ref.dtype)


@functools.partial(
    jax.jit,
    static_argnames=("n_out", "out_dtype", "tm_cap", "tn_cap", "tk_cap",
                     "max_resident_weight_bytes"))
def pallas_linear(x, weight_t, bias2d=None, *, n_out=None, out_dtype=None,
                  tm_cap=_TM_CAP, tn_cap=_TN_CAP, tk_cap=_TK_CAP,
                  max_resident_weight_bytes=_RESIDENT_W_BYTES):
    """y = x @ weight_t (+ bias).

    x: (M, K).  weight_t: (Kw, Nw) -- may already be padded to lane multiples.
    bias2d: (1, Nw) or None.  n_out: logical output width (<= Nw).
    """
    M, K = x.shape
    Kw, Nw = weight_t.shape
    assert Kw >= K, "weight rows must cover x features"
    n_out = Nw if n_out is None else n_out
    out_dtype = x.dtype if out_dtype is None else jnp.dtype(out_dtype)

    tk_e, Kp = _pick_feature_tile(Kw, tk_cap)
    tn_e, Np = _pick_feature_tile(Nw, tn_cap)
    pack = _sublane_pack(x.dtype)
    tm_e, Mp = _pick_row_tile(M, tm_cap, pack)

    # Pad operands to tile multiples (zeros don't change the matmul result).
    if (Mp, Kp) != (M, K):
        x = jnp.pad(x, ((0, Mp - M), (0, Kp - K)))
    if (Kp, Np) != (Kw, Nw):
        weight_t = jnp.pad(weight_t, ((0, Kp - Kw), (0, Np - Nw)))
    if bias2d is None:
        bias2d = jnp.zeros((1, Np), jnp.float32)
    elif bias2d.shape[1] != Np:
        bias2d = jnp.pad(bias2d, ((0, 0), (0, Np - bias2d.shape[1])))

    xi = x.dtype.itemsize
    wi = weight_t.dtype.itemsize
    bi = bias2d.dtype.itemsize
    oi = jnp.dtype(out_dtype).itemsize

    w_bytes = Kp * Np * wi
    fast_est = 2 * (tm_e * Kp * xi + w_bytes + Np * bi + tm_e * Np * oi)

    if w_bytes <= max_resident_weight_bytes and fast_est <= _FAST_VMEM_BUDGET:
        # Weight-resident fast path: weight/bias block index never changes, so
        # they are DMA'd from HBM once; 1-D grid over rows, no K loop/scratch.
        grid = (Mp // tm_e,)
        in_specs = [pl.BlockSpec((tm_e, Kp), lambda i: (i, 0)),
                    pl.BlockSpec((Kp, Np), lambda i: (0, 0)),
                    pl.BlockSpec((1, Np), lambda i: (0, 0))]
        out_specs = pl.BlockSpec((tm_e, Np), lambda i: (i, 0))
        kernel = _linear_fullk_kernel
        scratch = []
        semantics = ("parallel",)
        vmem_est = fast_est
    elif Kp == tk_e:
        # Single reduction step: 2-D (M, N) grid, write o_ref directly.
        grid = (Mp // tm_e, Np // tn_e)
        in_specs = [pl.BlockSpec((tm_e, Kp), lambda i, j: (i, 0)),
                    pl.BlockSpec((Kp, tn_e), lambda i, j: (0, j)),
                    pl.BlockSpec((1, tn_e), lambda i, j: (0, j))]
        out_specs = pl.BlockSpec((tm_e, tn_e), lambda i, j: (i, j))
        kernel = _linear_fullk_kernel
        scratch = []
        semantics = ("parallel", "parallel")
        vmem_est = 2 * (tm_e * Kp * xi + Kp * tn_e * wi + tn_e * bi
                        + tm_e * tn_e * oi)
    else:
        # K-tiled reduction: M leading parallel (feeds both v7x TensorCores
        # even when N fits one tile), N parallel, K trailing "arbitrary" with
        # an f32 VMEM accumulator, bias added only in the k==last finalize.
        grid = (Mp // tm_e, Np // tn_e, Kp // tk_e)
        in_specs = [pl.BlockSpec((tm_e, tk_e), lambda i, j, k: (i, k)),
                    pl.BlockSpec((tk_e, tn_e), lambda i, j, k: (k, j)),
                    pl.BlockSpec((1, tn_e), lambda i, j, k: (0, j))]
        out_specs = pl.BlockSpec((tm_e, tn_e), lambda i, j, k: (i, j))
        kernel = _linear_ktiled_kernel
        scratch = [pltpu.VMEM((tm_e, tn_e), jnp.float32)]
        semantics = ("parallel", "parallel", "arbitrary")
        vmem_est = (2 * (tm_e * tk_e * xi + tk_e * tn_e * wi + tn_e * bi
                         + tm_e * tn_e * oi) + tm_e * tn_e * 4)

    cost = pl.CostEstimate(
        flops=2 * Mp * Np * Kp,
        transcendentals=0,
        bytes_accessed=(Mp * Kp * xi + Kp * Np * wi + Np * bi + Mp * Np * oi))
    compiler_params = pltpu.CompilerParams(
        dimension_semantics=semantics,
        # >= 32 MiB raises v5e's 16 MiB scoped default; the 56 MiB cap stays
        # inside v7x's 64 MiB physical VMEM.
        vmem_limit_bytes=int(min(56 << 20,
                                 max(32 << 20, vmem_est + (8 << 20)))),
    )

    y = pl.pallas_call(
        kernel,
        out_shape=jax.ShapeDtypeStruct((Mp, Np), out_dtype),
        grid=grid,
        in_specs=in_specs,
        out_specs=out_specs,
        scratch_shapes=scratch,
        compiler_params=compiler_params,
        cost_estimate=cost,
    )(x, weight_t, bias2d)

    if (Mp, Np) != (M, n_out):
        y = y[:M, :n_out]
    return y


class LinearModule:
    """JAX/Pallas equivalent of gpse.Linear (torch.nn.Linear on batch.x)."""

    def __init__(self, in_channels: int, out_channels: int, bias: bool, key,
                 param_dtype=jnp.bfloat16):
        # bf16 params by default: MXU peak dtype on v5e/v6e/v7x, halves weight
        # and activation HBM traffic; accumulation is f32 inside the kernel.
        kw, kb = jax.random.split(key)
        bound = 1.0 / (in_channels ** 0.5)
        w = jax.random.uniform(kw, (in_channels, out_channels), jnp.float32,
                               -bound, bound)
        # Pre-pad + pre-cast ONCE to the lane-aligned (Kp, Np) the kernel uses,
        # so every forward call avoids per-call pad/cast copies of the params.
        _, kp = _pick_feature_tile(in_channels, _TK_CAP)
        _, np_ = _pick_feature_tile(out_channels, _TN_CAP)
        self.weight_t = jnp.pad(
            w, ((0, kp - in_channels), (0, np_ - out_channels))
        ).astype(param_dtype)
        if bias:
            b = jax.random.uniform(kb, (1, out_channels), jnp.float32,
                                   -bound, bound)
            self.bias = jnp.pad(b, ((0, 0), (0, np_ - out_channels)))  # f32
        else:
            self.bias = None
        self.in_channels = in_channels
        self.out_channels = out_channels
        self.compute_dtype = jnp.dtype(param_dtype)

    def _apply(self, x):
        return pallas_linear(
            x.astype(self.compute_dtype), self.weight_t, self.bias,
            n_out=self.out_channels, out_dtype=x.dtype)

    def __call__(self, batch):
        # Mirrors forward(): raw tensor or object carrying an `.x` field.
        if isinstance(batch, jnp.ndarray):
            return self._apply(batch)
        batch.x = self._apply(batch.x)
        return batch


class _Batch:
    """Minimal stand-in for a PyG batch object (only `.x` is used)."""
    pass


if __name__ == "__main__":
    key = jax.random.PRNGKey(0)
    k_x, k_mod, k_w, k_b = jax.random.split(key, 4)

    # 1) Module path, bf16 params, bias=True, raw tensor input (16 nodes x 32).
    in_c, out_c, n_nodes = 32, 64, 16
    x = jax.random.normal(k_x, (n_nodes, in_c), jnp.float32)
    mod = LinearModule(in_c, out_c, bias=True, key=k_mod)
    y = jax.block_until_ready(mod(x))
    w_f32 = mod.weight_t[:in_c, :out_c].astype(jnp.float32)
    b_f32 = mod.bias[:, :out_c]
    ref = x.astype(jnp.bfloat16).astype(jnp.float32) @ w_f32 + b_f32
    assert y.shape == (n_nodes, out_c) and y.dtype == jnp.float32
    assert jnp.allclose(y, ref, atol=2e-2, rtol=2e-2)

    # 2) Batch-object path (forward's `batch.x = ...` branch).
    batch = _Batch()
    batch.x = x
    batch = mod(batch)
    jax.block_until_ready(batch.x)
    assert jnp.allclose(batch.x, ref, atol=2e-2, rtol=2e-2)

    # 3) Non-lane-aligned, bias-free, f32 params (pad-and-slice path).
    mod2 = LinearModule(200, 300, bias=False, key=k_mod,
                        param_dtype=jnp.float32)
    x2 = jax.random.normal(k_x, (37, 200), jnp.float32)
    y2 = jax.block_until_ready(mod2(x2))
    ref2 = x2 @ mod2.weight_t[:200, :300]
    assert y2.shape == (37, 300)
    assert jnp.allclose(y2, ref2, atol=1e-4, rtol=1e-4)

    # 4) Force the K-tiled reduction path (small caps, no resident weight).
    x4 = jax.random.normal(k_x, (40, 300), jnp.float32)
    w4 = jax.random.normal(k_w, (300, 200), jnp.float32) * 0.05
    b4 = jax.random.normal(k_b, (1, 200), jnp.float32) * 0.05
    y4 = jax.block_until_ready(
        pallas_linear(x4, w4, b4, tm_cap=32, tn_cap=128, tk_cap=128,
                      max_resident_weight_bytes=0))
    assert y4.shape == (40, 200)
    assert jnp.allclose(y4, x4 @ w4 + b4, atol=1e-3, rtol=1e-3)

    # 5) Force the single-K-step, N-tiled path (no resident weight).
    y5 = jax.block_until_ready(
        pallas_linear(x4, w4, b4, tn_cap=128, tk_cap=512,
                      max_resident_weight_bytes=0))
    assert jnp.allclose(y5, x4 @ w4 + b4, atol=1e-3, rtol=1e-3)

    print("KERNEL_OK")
</pallas_src>

<mosaic_0001>
module attributes {stable_mosaic.version = 11 : i64} {
  func.func @_linear_fullk_kernel(%arg0: i32, %arg1: memref<16x128xbf16, #tpu.memory_space<vmem>>, %arg2: memref<128x128xbf16, #tpu.memory_space<vmem>>, %arg3: memref<1x128xf32, #tpu.memory_space<vmem>>, %arg4: memref<16x128xf32, #tpu.memory_space<vmem>>) attributes {dimension_semantics = [#tpu.dimension_semantics<parallel>], iteration_bounds = array<i64: 1>, scalar_prefetch = 0 : i64, scratch_operands = 0 : i64, tpu.core_type = #tpu.core_type<tc>, window_params = [{transform_indices = @transform_0, window_bounds = array<i64: 16, 128>}, {pipeline_mode = #tpu.pipeline_mode<synchronous>, transform_indices = @transform_1, window_bounds = array<i64: 128, 128>}, {pipeline_mode = #tpu.pipeline_mode<synchronous>, transform_indices = @transform_2, window_bounds = array<i64: 1, 128>}, {transform_indices = @transform_3, window_bounds = array<i64: 16, 128>}]} {
    %c0 = arith.constant 0 : index
    %c0_0 = arith.constant 0 : index
    %0 = vector.load %arg1[%c0, %c0_0] : memref<16x128xbf16, #tpu.memory_space<vmem>>, vector<16x128xbf16>
    %c0_1 = arith.constant 0 : index
    %c0_2 = arith.constant 0 : index
    %1 = vector.load %arg2[%c0_1, %c0_2] : memref<128x128xbf16, #tpu.memory_space<vmem>>, vector<128x128xbf16>
    %cst = arith.constant dense<0.000000e+00> : vector<16x128xf32>
    %2 = tpu.matmul %0, %1, %cst {dimension_numbers = #tpu.dot_dimension_numbers<[1], [0], [0], [1], [0, 0, 1, 1], [], []>} : vector<16x128xbf16>, vector<128x128xbf16>, vector<16x128xf32> -> vector<16x128xf32>
    %c0_3 = arith.constant 0 : index
    %c0_4 = arith.constant 0 : index
    %3 = vector.load %arg3[%c0_3, %c0_4] : memref<1x128xf32, #tpu.memory_space<vmem>>, vector<1x128xf32>
    %4 = vector.broadcast %3 : vector<1x128xf32> to vector<16x128xf32>
    %5 = arith.addf %2, %4 : vector<16x128xf32>
    %c0_5 = arith.constant 0 : index
    %c0_6 = arith.constant 0 : index
    %6 = vector.load %arg4[%c0_5, %c0_6] : memref<16x128xf32, #tpu.memory_space<vmem>>, vector<16x128xf32>
    tpu.vector_store %arg4[%c0_5, %c0_6], %5 {strides = array<i32>} : memref<16x128xf32, #tpu.memory_space<vmem>>, vector<16x128xf32>,
    return
  }
  func.func @transform_0(%arg0: i32) -> (i32, i32) {
    %c0_i32 = arith.constant 0 : i32
    %c0_i32_0 = arith.constant 0 : i32
    return %arg0, %c0_i32 : i32, i32
  }
  func.func @transform_1(%arg0: i32) -> (i32, i32) {
    %c0_i32 = arith.constant 0 : i32
    %c0_i32_0 = arith.constant 0 : i32
    %c0_i32_1 = arith.constant 0 : i32
    return %c0_i32, %c0_i32_0 : i32, i32
  }
  func.func @transform_2(%arg0: i32) -> (i32, i32) {
    %c0_i32 = arith.constant 0 : i32
    %c0_i32_0 = arith.constant 0 : i32
    %c0_i32_1 = arith.constant 0 : i32
    return %c0_i32, %c0_i32_0 : i32, i32
  }
  func.func @transform_3(%arg0: i32) -> (i32, i32) {
    %c0_i32 = arith.constant 0 : i32
    %c0_i32_0 = arith.constant 0 : i32
    return %arg0, %c0_i32 : i32, i32
  }
}

</mosaic_0001>

<bundles_post_ra>
// kernel: pallas_linear.1
= control target key start
LH: loop header
LB: loop body
LE: loop exit
PB: predicated region body
PF: predicated region fallthrough
CT: control target
= control target key end

     0   :  { %8 = vsyncpa [#allocation3], 0  ;;  %s331_s0 = inlined_call_operand.vmem [shape: bf16[16,128], index: 0, kind: input, shape index: {}]   ;;  %s332_s1 = inlined_call_operand.hbm [shape: bf16[128,128], index: 1, kind: input, shape index: {}]   ;;  %s333_s2 = inlined_call_operand.vmem [shape: f32[1,128], index: 2, kind: input, shape index: {}]   ;;  %s334_s3 = inlined_call_operand.hbm [shape: f32[16,128], index: 3, kind: output, shape index: {}]  }
   0x1   :  { %9 = vsyncpa [#allocation4], 0  ;;  %s273_s12 = smov [#allocation2]   ;;  %s225_s16 = scalar_lea.hbm %s332_s1, 1024 }
   0x2   :  { %s17_s13 = sshll.u32 %s273_s12, 4  ;;  %p226_p0 = scmp.ne.s32.totalorder %s332_s1, %s225_s16  ;;  %s18_s13 = int_to_ptr.vmem [resolvable:$true] %s17_s13 }
   0x3   :  { %p229_p1 = scmp.lt.u32.totalorder %s225_s16, %s332_s1 }
   0x5   :  { %p231_p2 = pnand %p229_p1, %p226_p0 }
   0x7   :  { %234 = shalt.err (!%p231_p2)
}
   0x8   :  { %s235_s21 = scalar_lea.vmem %s18_s13, 1024  ;;  %p240_p4 = scmp.lt.s32.totalorder %s18_s13, %s18_s13 }
   0x9   :  { %p236_p3 = scmp.ne.s32.totalorder %s18_s13, %s235_s21  ;;  %p241_p5 = scmp.lt.s32.totalorder %s235_s21, %s235_s21 }
   0xb   :  { %p242_p6 = por %p241_p5, %p240_p4 }
   0xd   :  { %p243_p7 = pnand %p242_p6, %p236_p3 }
   0xf   :  { %246 = shalt.err (!%p243_p7)
}
  0x10   :  { %s274_s22 = smov 64   ;;  %s275_s23 = smov 4  }
  0x11   :  { %23 = dma.hbm_to_vmem [thread:$0]  %s332_s1, 1024, %s18_s13, [#allocation3], %s274_s22, %s274_s22, %s275_s23  }
  0x12   :  { %269 = dma.done.wait [#allocation3], 1024  }
  0x13   :  { %270 = vsyncadd [#allocation3], 4294966272  ;;  %v276_v0 = vmov 0.0   ;;  %vm277_vm0 = vmmov 0   ;;  %v216_v1 = vld [vmem:[#allocation2] sm:$0xff]   ;;  %v217_v2 = vld [vmem:[#allocation2 + $0x8] sm:$0xff]  }
  0x14   :  { %188 = vmatprep.subr.bf16.mxu0 %v276_v0  ;;  %204 = vmatprep.mubr.msk.bf16.mxu0 %vm277_vm0, %v276_v0  ;;  %v218_v3 = vld [vmem:[#allocation2 + $0x10] sm:$0xff]   ;;  %v219_v4 = vld [vmem:[#allocation2 + $0x18] sm:$0xff]   ;;  %v220_v5 = vld [vmem:[#allocation2 + $0x20] sm:$0xff]   ;;  %s278_s29 = smov [#allocation5]  }
  0x15   :  { %189 = vmatpush3.bf16.msra.mxu0 %v216_v1  ;;  %v221_v6 = vld [vmem:[#allocation2 + $0x28] sm:$0xff]   ;;  %v222_v7 = vld [vmem:[#allocation2 + $0x30] sm:$0xff]   ;;  %v223_v8 = vld [vmem:[#allocation2 + $0x38] sm:$0xff]   ;;  %s157_s30 = sshll.u32 %s278_s29, 4  ;;  %s158_s30 = int_to_ptr.vmem [resolvable:$true] %s157_s30 }
  0x16   :  { %190 = vmatprep.subr.bf16.mxu0 %v276_v0  ;;  %v224_v9 = vld [vmem:[%s331_s0] sm:$0xff]   ;;  %s247_s4 = scalar_lea.vmem %s158_s30, 256  ;;  %p252_p9 = scmp.lt.s32.totalorder %s158_s30, %s158_s30 }
  0x17   :  { %v169_v10 = vld [vmem:[%s333_s2] ss:$0 sm:$0xff]  ;;  %p248_p8 = scmp.ne.s32.totalorder %s158_s30, %s247_s4  ;;  %p253_p10 = scmp.lt.s32.totalorder %s247_s4, %s247_s4 }
  0x19   :  { %191 = vmatpush3.bf16.msra.mxu0 %v217_v2  ;;  %p254_p11 = por %p253_p10, %p252_p9 }
  0x1a   :  { %192 = vmatprep.subr.bf16.mxu0 %v276_v0 }
  0x1b   :  { %p255_p12 = pnand %p254_p11, %p248_p8 }
  0x1d   :  { %193 = vmatpush3.bf16.msra.mxu0 %v218_v3 }
  0x1e   :  { %194 = vmatprep.subr.bf16.mxu0 %v276_v0 }
  0x21   :  { %195 = vmatpush3.bf16.msra.mxu0 %v219_v4 }
  0x22   :  { %196 = vmatprep.subr.bf16.mxu0 %v276_v0 }
  0x25   :  { %197 = vmatpush3.bf16.msra.mxu0 %v220_v5 }
  0x26   :  { %198 = vmatprep.subr.bf16.mxu0 %v276_v0 }
  0x29   :  { %199 = vmatpush3.bf16.msra.mxu0 %v221_v6 }
  0x2a   :  { %200 = vmatprep.subr.bf16.mxu0 %v276_v0 }
  0x2d   :  { %201 = vmatpush3.bf16.msra.mxu0 %v222_v7 }
  0x2e   :  { %202 = vmatprep.subr.bf16.mxu0 %v276_v0 }
  0x31   :  { %203 = vmatpush3.bf16.msra.mxu0 %v223_v8 }
  0x34   :  { %205 = vmatmul.mubr.bf16.vlgmr.msra.gmra.mrb[0].mxu0 %v224_v9 }
 0x107   :  { %v143_v11 = vpop.f32.mrb[0].mxu0 }
 0x108   :  { %v144_v12 = vadd.f32 %v169_v10, %v143_v11  ;;  %v206_v13 = vpop.f32.mrb[1].mxu0 }
 0x109   :  { %v146_v14 = vpop.f32.mrb[2].mxu0 }
 0x10a   :  { %150 = vst [vmem:[#allocation5] sm:$0xff] %v144_v12  ;;  %v147_v15 = vadd.f32 %v169_v10, %v146_v14  ;;  %v207_v16 = vpop.f32.mrb[3].mxu0 }
 0x10c   :  { %151 = vst [vmem:[#allocation5 + $0x8] sm:$0xff] %v147_v15 }
 0x10d   :  { %258 = shalt.err (!%p255_p12)
}
 0x10e   :  { %s259_s5 = scalar_lea.hbm %s334_s3, 256 }
 0x10f   :  { %p260_p13 = scmp.ne.s32.totalorder %s334_s3, %s259_s5  ;;  %p263_p0 = scmp.lt.u32.totalorder %s259_s5, %s334_s3 }
 0x111   :  { %p265_p1 = pnand %p263_p0, %p260_p13 }
 0x113   :  { %268 = shalt.err (!%p265_p1)
}
 0x114   :  { %s279_s10 = smov 128   ;;  %s280_s11 = smov 8  }
 0x115   :  { %163 = dma.vmem_to_hbm [thread:$0]  %s158_s30, 256, %s334_s3, [#allocation4], %s279_s10, %s279_s10, %s280_s11  }
 0x116   :  { %271 = dma.done.wait [#allocation4], 256  }
 0x117   :  { %272 = vsyncadd [#allocation4], 4294967040 }
 0x118   :  { %167 = vsyncpa [#allocation3], 1 }
 0x119   :  { %168 = vsyncpa [#allocation4], 1 }

</bundles_post_ra>
